<compile_context>
chip_gen: v6e
topology: v6e:2x2x1
jax: 0.10.0
libtpu: 0.0.40
codegen_flags: <defaults>
</compile_context>

<pallas_src>
import jax
import jax.numpy as jnp
from jax.experimental import pallas as pl
from jax.experimental.pallas import tpu as pltpu


def disc_kernel(x_ref, wt_ref, bt_ref, vw_ref, o_ref, acc_ref):
    # x_ref  : (tm, tk)  bf16  embedded-token rows, tiled over (B*S, H)
    # wt_ref : (tk, H)   bf16  stand-in dense weight, K-streamed
    # bt_ref : (1, H)    f32   stand-in dense bias
    # vw_ref : (H, 1)    bf16  v_head weight column (nn.Linear(H,1).weight transposed)
    # o_ref  : (1, tm)   f32   rewards, lane-dense row
    # acc_ref: (tm, H)   f32   K-reduction accumulator scratch
    k = pl.program_id(1)

    @pl.when(k == 0)
    def _init():
        acc_ref[...] = jnp.zeros_like(acc_ref)

    acc_ref[...] += jnp.dot(x_ref[...], wt_ref[...],
                            preferred_element_type=jnp.float32)

    @pl.when(k == pl.num_programs(1) - 1)
    def _finalize():
        # Bias + tanh on the bf16 EUP path; keep h bf16 for the v_head matvec.
        h = jnp.tanh((acc_ref[...] + bt_ref[...]).astype(jnp.bfloat16))       # (tm, H)
        # (tm,H) @ (H,1): avoids transposing the big h tile; only the (tm,1)
        # result is transposed onto lanes for the unmasked full-width store.
        logits = jnp.dot(h, vw_ref[...], preferred_element_type=jnp.float32)  # (tm, 1)
        o_ref[...] = jnp.transpose(jax.nn.sigmoid(logits), (1, 0))            # (1, tm)


def _vmem_budget_bytes(tm, tk, H):
    x_tiles = 2 * tm * tk * 2                    # bf16 activations, double-buffered
    w_tiles = 2 * tk * H * 2                     # bf16 weight K-tiles, double-buffered
    small = 2 * (H * 4 + H * 2 + tm * 4)         # bias f32 + vw bf16 + out row
    acc = tm * H * 4                             # f32 accumulator scratch
    temps = tm * H * (4 + 2)                     # f32 (acc+bias) temp + bf16 h
    return x_tiles + w_tiles + small + acc + temps


def discriminator_forward(input_ids, emb_table, w_t, b_t, v_w, *, tm=512, tk=512):
    """rewards = sigmoid(v_head(stand_in_transformer(input_ids))).squeeze(-1)"""
    assert tm % 128 == 0, "tm must be a multiple of 128 (lane-dense output blocks)"

    # Glue: embedding lookup (gather) stays in plain JAX.  Table / weight are kept
    # in bf16 outside the forward so the gather writes bf16 and there is no
    # per-call full-weight cast (both are no-ops below if already bf16).
    if emb_table.dtype != jnp.bfloat16:
        emb_table = emb_table.astype(jnp.bfloat16)
    if w_t.dtype != jnp.bfloat16:
        w_t = w_t.astype(jnp.bfloat16)

    x = emb_table[input_ids]                     # [B, S, H] bf16
    B, S, H = x.shape
    M = B * S
    x2 = x.reshape(M, H)                         # no jnp.pad: partial tail blocks handle M % tm

    tk = min(tk, H)
    assert H % tk == 0, "tk must divide H"
    assert tk % 128 == 0 or tk == H, "tk must be a multiple of 128 (or the full H)"

    # NOTE: for v7x megacore balance, make M a multiple of 2*tm upstream so the
    # 'parallel' row axis splits evenly across the two TensorCores.
    num_row_tiles = pl.cdiv(M, tm)
    num_k_tiles = H // tk

    # Per-generation VMEM budget: actual tile footprint (+margin), capped by the
    # chip's reported capacity (v7x: 64 MiB per TC; v5e/v6e: 128 MiB).
    budget = int(1.25 * _vmem_budget_bytes(tm, tk, H)) + (4 << 20)
    try:
        cap = pltpu.get_tpu_info().vmem_capacity_bytes - (8 << 20)
    except Exception:
        cap = 56 << 20                           # v7x-safe fallback
    vmem_limit = int(max(32 << 20, min(budget, cap)))

    out = pl.pallas_call(
        disc_kernel,
        out_shape=jax.ShapeDtypeStruct((1, M), jnp.float32),
        grid_spec=pltpu.PrefetchScalarGridSpec(
            num_scalar_prefetch=0,
            grid=(num_row_tiles, num_k_tiles),
            in_specs=[
                pl.BlockSpec((tm, tk), lambda i, k: (i, k)),   # activations (row, K tile)
                pl.BlockSpec((tk, H), lambda i, k: (k, 0)),    # dense weight, K-streamed
                pl.BlockSpec((1, H), lambda i, k: (0, 0)),     # dense bias
                pl.BlockSpec((H, 1), lambda i, k: (0, 0)),     # v_head weight column
            ],
            # lane-dense output slab: each row tile writes one full (1, tm) row chunk
            out_specs=pl.BlockSpec((1, tm), lambda i, k: (0, i)),
            scratch_shapes=[pltpu.VMEM((tm, H), jnp.float32)],
        ),
        compiler_params=pltpu.CompilerParams(
            # row-tile axis independent -> megacore-shardable; K axis is a reduction
            dimension_semantics=("parallel", "arbitrary"),
            vmem_limit_bytes=vmem_limit,
        ),
    )(
        x2,
        w_t,
        b_t.reshape(1, H).astype(jnp.float32),
        v_w.reshape(1, H).T.astype(jnp.bfloat16),   # [1,H] Linear weight -> (H,1) column
    )

    return out[0].reshape(B, S)                  # squeeze(-1) -> rewards [B, S]


if __name__ == "__main__":
    # Small but path-covering shapes: H=256 with tk=128 exercises the K-tiled
    # accumulator (2 k steps); S=160 with tm=128 exercises multiple row tiles plus
    # a partial tail block.  Production defaults are tm=512, tk=512 at H>=2048.
    B, S, H, V = 2, 160, 256, 64

    key = jax.random.PRNGKey(0)
    k_ids, k_emb, k_wt, k_bt, k_vw = jax.random.split(key, 5)

    input_ids = jax.random.randint(k_ids, (B, S), 0, V, dtype=jnp.int32)
    emb_f32 = jax.random.normal(k_emb, (V, H), dtype=jnp.float32) * 0.02
    w_f32 = jax.random.normal(k_wt, (H, H), dtype=jnp.float32) * (1.0 / jnp.sqrt(H))
    b_f32 = jax.random.normal(k_bt, (H,), dtype=jnp.float32) * 0.01
    # v_head: nn.Linear(H, 1, bias=False) -> weight shape [1, H]
    v_f32 = jax.random.normal(k_vw, (1, H), dtype=jnp.float32) * (1.0 / jnp.sqrt(H))

    # Parameters are stored bf16 outside the forward (bf16 gather, no per-call cast).
    emb_bf16 = emb_f32.astype(jnp.bfloat16)
    w_bf16 = w_f32.astype(jnp.bfloat16)

    rewards = discriminator_forward(input_ids, emb_bf16, w_bf16, b_f32, v_f32,
                                    tm=128, tk=128)
    rewards = jax.block_until_ready(rewards)

    # Pure-JAX f32 reference using the same bf16-quantized parameters
    # (remaining delta: bf16 tanh + bf16 v_head operands in the kernel).
    x_ref = emb_bf16[input_ids].astype(jnp.float32)
    h_ref = jnp.tanh(
        jnp.einsum("bsh,hk->bsk", x_ref, w_bf16.astype(jnp.float32),
                   precision=jax.lax.Precision.HIGHEST) + b_f32
    )
    ref = jax.nn.sigmoid(
        jnp.einsum("bsh,h->bs", h_ref, v_f32[0],
                   precision=jax.lax.Precision.HIGHEST)
    )

    assert rewards.shape == (B, S), rewards.shape
    max_err = float(jnp.max(jnp.abs(rewards - ref)))
    assert jnp.allclose(rewards, ref, atol=2e-3, rtol=2e-3), max_err
    print("KERNEL_OK")
</pallas_src>

<mosaic_0001>
module attributes {stable_mosaic.version = 11 : i64} {
  func.func @disc_kernel(%arg0: i32, %arg1: i32, %arg2: memref<128x128xbf16, #tpu.memory_space<vmem>>, %arg3: memref<128x256xbf16, #tpu.memory_space<vmem>>, %arg4: memref<1x256xf32, #tpu.memory_space<vmem>>, %arg5: memref<256x1xbf16, #tpu.memory_space<vmem>>, %arg6: memref<1x128xf32, #tpu.memory_space<vmem>>, %arg7: memref<128x256xf32, #tpu.memory_space<vmem>>) attributes {dimension_semantics = [#tpu.dimension_semantics<parallel>, #tpu.dimension_semantics<arbitrary>], iteration_bounds = array<i64: 3, 2>, scalar_prefetch = 0 : i64, scratch_operands = 1 : i64, tpu.core_type = #tpu.core_type<tc>, window_params = [{transform_indices = @transform_0, window_bounds = array<i64: 128, 128>}, {transform_indices = @transform_1, window_bounds = array<i64: 128, 256>}, {pipeline_mode = #tpu.pipeline_mode<synchronous>, transform_indices = @transform_2, window_bounds = array<i64: 1, 256>}, {pipeline_mode = #tpu.pipeline_mode<synchronous>, transform_indices = @transform_3, window_bounds = array<i64: 256, 1>}, {transform_indices = @transform_4, window_bounds = array<i64: 1, 128>}]} {
    %c0_i32 = arith.constant 0 : i32
    %0 = arith.cmpi eq, %arg1, %c0_i32 : i32
    %1 = arith.extui %0 : i1 to i32
    %c0_i32_0 = arith.constant 0 : i32
    %2 = arith.cmpi ne, %1, %c0_i32_0 : i32
    scf.if %2 {
      %cst_9 = arith.constant 0.000000e+00 : f32
      %12 = vector.broadcast %cst_9 : f32 to vector<128x256xf32>
      %c0_10 = arith.constant 0 : index
      %c0_11 = arith.constant 0 : index
      %13 = vector.load %arg7[%c0_10, %c0_11] : memref<128x256xf32, #tpu.memory_space<vmem>>, vector<128x256xf32>
      tpu.vector_store %arg7[%c0_10, %c0_11], %12 {strides = array<i32>} : memref<128x256xf32, #tpu.memory_space<vmem>>, vector<128x256xf32>,
    } else {
    }
    %c0 = arith.constant 0 : index
    %c0_1 = arith.constant 0 : index
    %3 = vector.load %arg7[%c0, %c0_1] : memref<128x256xf32, #tpu.memory_space<vmem>>, vector<128x256xf32>
    %c0_2 = arith.constant 0 : index
    %c0_3 = arith.constant 0 : index
    %4 = vector.load %arg2[%c0_2, %c0_3] : memref<128x128xbf16, #tpu.memory_space<vmem>>, vector<128x128xbf16>
    %c0_4 = arith.constant 0 : index
    %c0_5 = arith.constant 0 : index
    %5 = vector.load %arg3[%c0_4, %c0_5] : memref<128x256xbf16, #tpu.memory_space<vmem>>, vector<128x256xbf16>
    %cst = arith.constant dense<0.000000e+00> : vector<128x256xf32>
    %6 = tpu.matmul %4, %5, %cst {dimension_numbers = #tpu.dot_dimension_numbers<[1], [0], [0], [1], [0, 0, 1, 1], [], []>} : vector<128x128xbf16>, vector<128x256xbf16>, vector<128x256xf32> -> vector<128x256xf32>
    %7 = arith.addf %3, %6 : vector<128x256xf32>
    %c0_6 = arith.constant 0 : index
    %c0_7 = arith.constant 0 : index
    %8 = vector.load %arg7[%c0_6, %c0_7] : memref<128x256xf32, #tpu.memory_space<vmem>>, vector<128x256xf32>
    tpu.vector_store %arg7[%c0_6, %c0_7], %7 {strides = array<i32>} : memref<128x256xf32, #tpu.memory_space<vmem>>, vector<128x256xf32>,
    %c1_i32 = arith.constant 1 : i32
    %9 = arith.cmpi eq, %arg1, %c1_i32 : i32
    %10 = arith.extui %9 : i1 to i32
    %c0_i32_8 = arith.constant 0 : i32
    %11 = arith.cmpi ne, %10, %c0_i32_8 : i32
    scf.if %11 {
      %c0_9 = arith.constant 0 : index
      %c0_10 = arith.constant 0 : index
      %12 = vector.load %arg7[%c0_9, %c0_10] : memref<128x256xf32, #tpu.memory_space<vmem>>, vector<128x256xf32>
      %c0_11 = arith.constant 0 : index
      %c0_12 = arith.constant 0 : index
      %13 = vector.load %arg4[%c0_11, %c0_12] : memref<1x256xf32, #tpu.memory_space<vmem>>, vector<1x256xf32>
      %14 = vector.broadcast %13 : vector<1x256xf32> to vector<128x256xf32>
      %15 = arith.addf %12, %14 : vector<128x256xf32>
      %16 = arith.truncf %15 : vector<128x256xf32> to vector<128x256xbf16>
      %17 = math.tanh %16 : vector<128x256xbf16>
      %c0_13 = arith.constant 0 : index
      %c0_14 = arith.constant 0 : index
      %18 = vector.load %arg5[%c0_13, %c0_14] : memref<256x1xbf16, #tpu.memory_space<vmem>>, vector<256x1xbf16>
      %cst_15 = arith.constant dense<0.000000e+00> : vector<128x1xf32>
      %19 = tpu.matmul %17, %18, %cst_15 {dimension_numbers = #tpu.dot_dimension_numbers<[1], [0], [0], [1], [0, 0, 1, 1], [], []>} : vector<128x256xbf16>, vector<256x1xbf16>, vector<128x1xf32> -> vector<128x1xf32>
      %20 = arith.negf %19 : vector<128x1xf32>
      %21 = math.exp %20 : vector<128x1xf32>
      %cst_16 = arith.constant 1.000000e+00 : f32
      %22 = vector.broadcast %cst_16 : f32 to vector<128x1xf32>
      %23 = arith.addf %22, %21 : vector<128x1xf32>
      %24 = arith.divf %22, %23 : vector<128x1xf32>
      %25 = tpu.transpose %24, [1, 0] : vector<128x1xf32> -> vector<1x128xf32>
      %c0_17 = arith.constant 0 : index
      %c0_18 = arith.constant 0 : index
      %26 = vector.load %arg6[%c0_17, %c0_18] : memref<1x128xf32, #tpu.memory_space<vmem>>, vector<1x128xf32>
      tpu.vector_store %arg6[%c0_17, %c0_18], %25 {strides = array<i32>} : memref<1x128xf32, #tpu.memory_space<vmem>>, vector<1x128xf32>,
    } else {
    }
    return
  }
  func.func @transform_0(%arg0: i32, %arg1: i32) -> (i32, i32) {
    %c0_i32 = arith.constant 0 : i32
    return %arg0, %arg1 : i32, i32
  }
  func.func @transform_1(%arg0: i32, %arg1: i32) -> (i32, i32) {
    %c0_i32 = arith.constant 0 : i32
    %c0_i32_0 = arith.constant 0 : i32
    return %arg1, %c0_i32 : i32, i32
  }
  func.func @transform_2(%arg0: i32, %arg1: i32) -> (i32, i32) {
    %c0_i32 = arith.constant 0 : i32
    %c0_i32_0 = arith.constant 0 : i32
    %c0_i32_1 = arith.constant 0 : i32
    return %c0_i32, %c0_i32_0 : i32, i32
  }
  func.func @transform_3(%arg0: i32, %arg1: i32) -> (i32, i32) {
    %c0_i32 = arith.constant 0 : i32
    %c0_i32_0 = arith.constant 0 : i32
    %c0_i32_1 = arith.constant 0 : i32
    return %c0_i32, %c0_i32_0 : i32, i32
  }
  func.func @transform_4(%arg0: i32, %arg1: i32) -> (i32, i32) {
    %c0_i32 = arith.constant 0 : i32
    %c0_i32_0 = arith.constant 0 : i32
    return %c0_i32, %arg0 : i32, i32
  }
}

</mosaic_0001>

<bundles_post_ra>
// kernel: tpu_custom_call.1
= control target key start
LH: loop header
LB: loop body
LE: loop exit
PB: predicated region body
PF: predicated region fallthrough
CT: control target
= control target key end

     0   :  { %s2371_s0 = inlined_call_operand.hbm [shape: bf16[320,256], index: 0, kind: input, shape index: {}]   ;;  %s2372_s1 = inlined_call_operand.hbm [shape: bf16[256,256], index: 1, kind: input, shape index: {}]   ;;  %s2373_s2 = inlined_call_operand.vmem [shape: f32[1,256], index: 2, kind: input, shape index: {}]   ;;  %s2374_s3 = inlined_call_operand.vmem [shape: bf16[256,1], index: 3, kind: input, shape index: {}]   ;;  %s2375_s4 = inlined_call_operand.hbm [shape: f32[1,320], index: 4, kind: output, shape index: {}]  }
   0x1   :  { %2388 = sst [smem:[#allocation23_spill]] %s2371_s0 }
   0x2   :  { %2389 = sst [smem:[#allocation24_spill]] %s2375_s4 }
   0x3   :  { %9 = vsyncpa [#allocation4], 0 }
   0x4   :  { %11 = vsyncpa [#allocation4 + $0x1], 0 }
   0x5   :  { %12 = vsyncpa [#allocation7], 0 }
   0x6   :  { %14 = vsyncpa [#allocation7 + $0x1], 0 }
   0x7   :  { %15 = vsyncpa [#allocation5], 0 }
   0x8   :  { %17 = vsyncpa [#allocation5 + $0x1], 0  ;;  %s1960_s15 = smov 0   ;;  %s1962_s16 = smov 0  }
   0x9   :  { %s1964_s17 = smov 0   ;;  %s1966_s18 = smov 0  }
   0xa   :  { %s1968_s19 = smov 0   ;;  %s1970_s20 = smov 0  }
   0xb   :  { %s1972_s21 = smov 0   ;;  %s1974_s22 = smov 0  }
   0xc   :  { %s1976_s23 = smov 0   ;;  %s1978_s24 = smov 0  }
   0xd   :  { %s1980_s25 = smov 0   ;;  %s1982_s26 = smov 0  }
   0xe   :  { %s1984_s27 = smov 0   ;;  %s1986_s28 = smov 0  }
   0xf LB: > { %2390 = sst [smem:[#allocation12_spill]] %s1871_s15  ;;  %s2376_s29 = sadd.s32 4294967295, %s1923_s28   ;;  %s1923_s28 = sphi %s1986_s28, %s23_s28   ;;  %s1919_s27 = sphi %s1984_s27, %s2436_s27   ;;  %s1915_s26 = sphi %s1982_s26, %s2435_s26   ;;  %s1911_s25 = sphi %s1980_s25, %s2423_s25   ;;  %s1907_s24 = sphi %s1978_s24, %s2434_s24   ;;  %s1903_s23 = sphi %s1976_s23, %s2422_s23   ;;  %s1899_s22 = sphi %s1974_s22, %s2433_s22   ;;  %s1895_s21 = sphi %s1972_s21, %s2432_s21   ;;  %s1891_s20 = sphi %s1970_s20, %s2431_s20   ;;  %s1887_s19 = sphi %s1968_s19, %s2430_s19   ;;  %s1883_s18 = sphi %s1966_s18, %s2429_s18   ;;  %s1879_s17 = sphi %s1964_s17, %s2419_s17   ;;  %s1875_s16 = sphi %s1962_s16, %s2428_s16   ;;  %s1871_s15 = sphi %s1960_s15, %s2427_s15  }
  0x10   : > { %2391 = sst [smem:[#allocation13_spill]] %s1879_s17  ;;  %s32_s5 = sadd.s32 1, %s1915_s26 }
  0x11   : > { %2392 = sst [smem:[#allocation14_spill]] %s1903_s23  ;;  %s35_s6 = sadd.s32 1, %s1919_s27 }
  0x12   : > { %2393 = sst [smem:[#allocation15_spill]] %s1919_s27  ;;  %p33_p0 = scmp.ge.s32.totalorder %s32_s5, 2 }
  0x13   : > { %s44_s7 = sadd.s32 1, %s1903_s23  ;;  %p51_p1 = scmp.ne.s32.totalorder %s1903_s23, %s1899_s22 }
  0x14   : > { %p52_p2 = scmp.eq.s32.totalorder %s1923_s28, 0  ;;  %s2438_s5 = smov (%p33_p0, %s32_s5), 0 }
  0x15   : > { %2394 = sst [smem:[#allocation16_spill]] %s2438_s5  ;;  %s2440_s6 = smov (!%p33_p0, %s35_s6), %s1919_s27 }
  0x16   : > { %s40_s8 = ssub.s32 %s1915_s26, %s2438_s5  ;;  %p2043_p3 = por %p52_p2, %p51_p1 }
  0x17   : > { %p37_p4 = scmp.ge.s32.totalorder %s2440_s6, 3  ;;  %p57_p5 = scmp.ne.s32.totalorder %s1899_s22, %s1895_s21 }
  0x18   : > { %p2050_p6 = scmp.eq.s32.totalorder %s2376_s29, 0  ;;  %p68_p7 = scmp.eq.s32.totalorder %s40_s8, 0 }
  0x19   : > { %s2442_s6 = smov (%p37_p4, %s2440_s6), 0  ;;  %s70_s12 = sadd.s32 1, %s1891_s20 }
  0x1a   : > { %2397 = sst [smem:[#allocation17_spill]] %s2442_s6  ;;  %p2058_p8 = por %p2050_p6, %p57_p5 }
  0x1b   : > { %s39_s13 = ssub.s32 %s1919_s27, %s2442_s6  ;;  %p77_p9 = scmp.ne.s32.totalorder %s1891_s20, %s1887_s19 }
  0x1c   : > { %s41_s14 = sor.u32 %s40_s8, %s39_s13  ;;  %p83_p10 = scmp.ne.s32.totalorder %s1887_s19, %s1883_s18 }
  0x1d   : > { %p42_p11 = scmp.eq.s32.totalorder %s41_s14, 0  ;;  %p2071_p12 = por %p77_p9, %p52_p2 }
  0x1e   : > { %s2076_s30 = scalar_select %p68_p7, %s1891_s20, %s70_s12  }
  0x1f   : > { %s2079_s29 = scalar_select %p42_p11, %s1903_s23, %s44_s7  }
  0x20   : > { %2400 = sst [smem:[#allocation18_spill]] %s2076_s30  ;;  %p2083_p13 = por %p83_p10, %p2050_p6 }
  0x21   : > { %2401 = sst [smem:[#allocation19_spill]] %s2079_s29  ;;  %p136_p0 = scmp.eq.s32.totalorder %s39_s13, 0 }
  0x22   : > { %s138_s6 = sadd.s32 1, %s1879_s17  ;;  %p148_p1 = scmp.ne.s32.totalorder %s1879_s17, %s1875_s16 }
  0x23   : > { %s2091_s8 = scalar_select %p136_p0, %s1879_s17, %s138_s6  }
  0x24   : > { %s2404_s18 = sadd.s32 4294967295, %s1923_s28   ;;  %p154_p2 = scmp.ne.s32.totalorder %s1875_s16, %s1871_s15 }
  0x25   : > { %2403 = sst [smem:[#allocation20_spill]] %s2091_s8  ;;  %p149_p4 = scmp.eq.s32.totalorder %s2404_s18, 5 }
  0x26   : > { %s2405_s14 = sadd.s32 4294967294, %s1923_s28   ;;  %p1274_p6 = scmp.ge.s32.totalorder %s1923_s28, 6 }
  0x27   : > { %p155_p5 = scmp.eq.s32.totalorder %s2405_s14, 5  ;;  %p2099_p9 = por %p149_p4, %p148_p1 }
  0x29   : > { %s2406_s12 = scalar_select %p2099_p9, 1, 0 }
  0x2a   : > { %p2103_p7 = por %p155_p5, %p154_p2  ;;  %177 = sbr.rel (%p1274_p6) target bundleno = 103 (0x67), region = 24 }
  0x2b   : > { %2407 = sst [smem:[#allocation21_spill]] %s2406_s12 }
  0x2c   : > { %s2408_s7 = scalar_select %p2103_p7, 1, 0 }
  0x2e   : > { %2409 = sst [smem:[#allocation22_spill]] %s2408_s7 }
  0x2f   : > { %180 = sbr.rel (!%p2043_p3) target bundleno = 87 (0x57), region = 28  ;;  %s181_s6 = sand.u32 (%p2043_p3), 1, %s1903_s23  }
  0x30   : > { %s1276_s10 = sshll.u32 (%p2043_p3), %s1919_s27, 4  ;;  %s1275_s13 = sshll.u32 (%p2043_p3), %s181_s6, 6 }
  0x31   : > { %s187_s18 = ssub.s32 (%p2043_p3), 40, %s1276_s10  ;;  %s2115_s30 = scalar_lea.sflag (%p2043_p3), [#allocation4], %s181_s6 }
  0x32   : > { %p188_p10 = scmp.lt.s32.totalorder (%p2043_p3), %s187_s18, 16  ;;  %s185_s8 = scalar_lea.vmem (%p2043_p3), [#allocation3], %s1275_s13 }
  0x34   : > { %s2444_s18 = smov (!%p188_p10, %s187_s18), 16 }
  0x35   : > { %s2112_s14 = sshll.u32 %s2444_s18, 6 }
  0x36   : > { %s192_s29 = ssub.s32 1024, %s2112_s14 }
  0x37   : > { %193 = vsyncadd %s2115_s30, %s192_s29  ;;  %p1278_p3 = scmp.ne.s32.totalorder %s2112_s14, 0  ;;  %s1351_s9 = sshll.u32 %s1919_s27, 5 }
  0x38   : > { %s196_s23 = sadd.s32 %s1915_s26, %s1351_s9  ;;  %s200_s10 = sshll.u32 %s185_s8, 4  ;;  %s2121_s10 = int_to_ptr.vmem [resolvable:$true] %s200_s10 }
  0x39   : > { %s1280_s17 = sshll.u32 %s196_s23, 6  ;;  %s2410_s0 = sld [smem:[#allocation23_spill]] }
  0x3f   : > { %s2126_s6 = scalar_lea.hbm %s2410_s0, %s1280_s17  ;;  %s1727_s9 = scalar_lea.hbm %s2410_s0, 5120 }
  0x40   : > { %s1723_s29 = scalar_lea.hbm %s2126_s6, %s2112_s14 }
  0x41   : > { %p1724_p11 = scmp.ne.s32.totalorder %s2126_s6, %s1723_s29  ;;  %p1729_p4 = scmp.lt.s32.totalorder %s1727_s9, %s1723_s29 }
  0x43   : > { %p1725_p0 = pnand %p1724_p11, %p1278_p3 }
  0x45   : > { %p1726_p1 = pneg %p1725_p0 }
  0x47   : > { %p1731_p2 = pnand %p1729_p4, %p1726_p1 }
  0x49   : > { %1734 = shalt.err (!%p1731_p2)
}
  0x4a   : > { %s1735_s17 = scalar_lea.vmem %s2121_s10, %s2112_s14  ;;  %s1925_s23 = smov [#allocation3]  }
  0x4b   : > { %p1736_p5 = scmp.ne.s32.totalorder %s2121_s10, %s1735_s17  ;;  %s1739_s8 = sshll.u32 %s1925_s23, 4  ;;  %s1740_s8 = int_to_ptr.vmem [resolvable:$false] %s1739_s8 }
  0x4c   : > { %s1741_s7 = scalar_lea.vmem %s1740_s8, 2048  ;;  %p1742_p11 = scmp.lt.s32.totalorder %s2121_s10, %s1740_s8 }
  0x4d   : > { %p1737_p6 = pnand %p1736_p5, %p1278_p3  ;;  %p1743_p0 = scmp.lt.s32.totalorder %s1741_s7, %s1735_s17 }
  0x4f   : > { %p1738_p10 = pneg %p1737_p6  ;;  %p1744_p7 = por %p1743_p0, %p1742_p11 }
  0x51   : > { %p1745_p9 = pnand %p1744_p7, %p1738_p10 }
  0x53   : > { %1748 = shalt.err (!%p1745_p9)
}
  0x54   : > { %s1926_s15 = smov 128   ;;  %s1927_s18 = smov 64  }
  0x55   : > { %s1928_s29 = smov 4  }
  0x56   : > { %206 = dma.hbm_to_vmem [thread:$0]  (%p1278_p3), %s2126_s6, %s2112_s14, %s2121_s10, %s2115_s30, %s1926_s15, %s1927_s18, %s1928_s29  }
  0x57 PF: > { %s210_s13 = sand.u32 1, %s1891_s20   ;;  %s1353_s9 = sshll.u32 %s1915_s26, 11 }
  0x58   : > { %s1283_s17 = sshll.u32 %s210_s13, 7  ;;  %s221_s7 = scalar_lea.hbm %s2372_s1, %s1353_s9 }
  0x59   : > { %s214_s0 = scalar_lea.vmem [#allocation6], %s1283_s17  ;;  %s211_s4 = scalar_lea.sflag [#allocation7], %s210_s13 }
  0x5a   : > { %s222_s27 = sshll.u32 %s214_s0, 4  ;;  %s1929_s30 = smov [#allocation6]   ;;  %s223_s27 = int_to_ptr.vmem [resolvable:$true] %s222_s27 }
  0x5b   : > { %s1761_s12 = scalar_lea.vmem %s223_s27, 2048  ;;  %s1765_s14 = sshll.u32 %s1929_s30, 4  ;;  %s1766_s14 = int_to_ptr.vmem [resolvable:$false] %s1765_s14 }
  0x5c   : > { %p1762_p9 = scmp.ne.s32.totalorder %s223_s27, %s1761_s12  ;;  %s1767_s10 = scalar_lea.vmem %s1766_s14, 4096 }
  0x5d   : > { %p1768_p1 = scmp.lt.s32.totalorder %s223_s27, %s1766_s14  ;;  %p1769_p4 = scmp.lt.s32.totalorder %s1767_s10, %s1761_s12 }
  0x5e   : > { %p1763_p7 = pnand %p1762_p9, %p2071_p12 }
  0x5f   : > { %p1770_p2 = por %p1769_p4, %p1768_p1 }
  0x60   : > { %p1764_p3 = pneg %p1763_p7 }
  0x62   : > { %p1771_p5 = pnand %p1770_p2, %p1764_p3 }
  0x64   : > { %1774 = shalt.err (!%p1771_p5)
}
  0x65   : > { %s1930_s6 = smov 128   ;;  %s1931_s15 = smov 8  }
  0x66   : > { %1450 = dma.hbm_to_vmem [thread:$0]  (%p2071_p12), %s221_s7, 2048, %s223_s27, %s211_s4, %s1930_s6, %s1930_s6, %s1931_s15  }
  0x67 PF: > { %p1287_p6 = scmp.ge.s32.totalorder %s1923_s28, 1  ;;  %p230_p10 = scmp.lt.s32.totalorder %s1923_s28, 7 }
  0x69   : > { %p231_p11 = pnand %p1287_p6, %p230_p10 }
  0x6a   : > { %s236_s0 = sand.u32 (!%p231_p11), 1, %s1899_s22  }
  0x6b   : > { %234 = sbr.rel (%p231_p11) target bundleno = 816 (0x330), region = 36  ;;  %s1288_s18 = sshll.u32 (!%p231_p11), %s236_s0, 6 }
  0x6c   : > { %s237_s12 = scalar_lea.sflag (!%p231_p11), [#allocation4], %s236_s0  ;;  %s2160_s29 = scalar_lea.vmem (!%p231_p11), [#allocation3], %s1288_s18 }
  0x70   : > { %1858 = dma.done.wait (%p2058_p8), %s237_s12, 1024  }
  0x71   : > { %1860 = vsyncadd (%p2058_p8), %s237_s12, 4294966272  ;;  %s245_s4 = sand.u32 1, %s1887_s19  }
  0x72   : > { %s1289_s27 = sshll.u32 %s245_s4, 7  ;;  %s246_s21 = scalar_lea.sflag [#allocation7], %s245_s4 }
  0x73   : > { %s2167_s13 = scalar_lea.vmem [#allocation6], %s1289_s27 }
  0x74   : > { %1862 = dma.done.wait (%p2083_p13), %s246_s21, 2048  }
  0x75   : > { %1864 = vsyncadd (%p2083_p13), %s246_s21, 4294965248  ;;  %s276_s9 = sand.u32 1, %s1875_s16   ;;  %p1290_p8 = scmp.ne.s32.totalorder %s1907_s24, 0 }
  0x76   : > { %s2176_s17 = scalar_lea.vmem [#allocation8], %s276_s9 }
  0x77   : > { %288 = sbr.rel (%p1290_p8) target bundleno = 141 (0x8d), region = 48 }
  0x7c   : > { %v1932_v0 = vmov 0.0  }
  0x7d   : > { %289 = vst [vmem:[#allocation2 + $0xb0] sm:$0xff] %v1932_v0  ;;  %290 = vst [vmem:[#allocation2] sm:$0xff] %v1932_v0 }
  0x7e   : > { %291 = vst [vmem:[#allocation2 + $0xd8] sm:$0xff] %v1932_v0  ;;  %292 = vst [vmem:[#allocation2 + $0x18] sm:$0xff] %v1932_v0 }
  0x7f   : > { %293 = vst [vmem:[#allocation2 + $0x50] sm:$0xff] %v1932_v0  ;;  %294 = vst [vmem:[#allocation2 + $0x68] sm:$0xff] %v1932_v0 }
  0x80   : > { %295 = vst [vmem:[#allocation2 + $0x30] sm:$0xff] %v1932_v0  ;;  %296 = vst [vmem:[#allocation2 + $0x48] sm:$0xff] %v1932_v0 }
  0x81   : > { %297 = vst [vmem:[#allocation2 + $0x80] sm:$0xff] %v1932_v0  ;;  %298 = vst [vmem:[#allocation2 + $0x88] sm:$0xff] %v1932_v0 }
  0x82   : > { %299 = vst [vmem:[#allocation2 + $0xe8] sm:$0xff] %v1932_v0  ;;  %300 = vst [vmem:[#allocation2 + $0xb8] sm:$0xff] %v1932_v0 }
  0x83   : > { %301 = vst [vmem:[#allocation2 + $0x60] sm:$0xff] %v1932_v0  ;;  %302 = vst [vmem:[#allocation2 + $0xf0] sm:$0xff] %v1932_v0 }
  0x84   : > { %303 = vst [vmem:[#allocation2 + $0x8] sm:$0xff] %v1932_v0  ;;  %304 = vst [vmem:[#allocation2 + $0x78] sm:$0xff] %v1932_v0 }
  0x85   : > { %305 = vst [vmem:[#allocation2 + $0x38] sm:$0xff] %v1932_v0  ;;  %306 = vst [vmem:[#allocation2 + $0x58] sm:$0xff] %v1932_v0 }
  0x86   : > { %307 = vst [vmem:[#allocation2 + $0x40] sm:$0xff] %v1932_v0  ;;  %308 = vst [vmem:[#allocation2 + $0xc8] sm:$0xff] %v1932_v0 }
  0x87   : > { %309 = vst [vmem:[#allocation2 + $0xe0] sm:$0xff] %v1932_v0  ;;  %310 = vst [vmem:[#allocation2 + $0x90] sm:$0xff] %v1932_v0 }
  0x88   : > { %311 = vst [vmem:[#allocation2 + $0x70] sm:$0xff] %v1932_v0  ;;  %312 = vst [vmem:[#allocation2 + $0xc0] sm:$0xff] %v1932_v0 }
  0x89   : > { %313 = vst [vmem:[#allocation2 + $0xa8] sm:$0xff] %v1932_v0  ;;  %314 = vst [vmem:[#allocation2 + $0xd0] sm:$0xff] %v1932_v0 }
  0x8a   : > { %315 = vst [vmem:[#allocation2 + $0x10] sm:$0xff] %v1932_v0  ;;  %316 = vst [vmem:[#allocation2 + $0x28] sm:$0xff] %v1932_v0 }
  0x8b   : > { %317 = vst [vmem:[#allocation2 + $0xa0] sm:$0xff] %v1932_v0  ;;  %318 = vst [vmem:[#allocation2 + $0xf8] sm:$0xff] %v1932_v0 }
  0x8c   : > { %319 = vst [vmem:[#allocation2 + $0x20] sm:$0xff] %v1932_v0  ;;  %320 = vst [vmem:[#allocation2 + $0x98] sm:$0xff] %v1932_v0 }
  0x8d PF: > { %v1579_v1 = vld [vmem:[%s2167_s13 + $0x74] ss:$8 sps:$4 sm:$0xff]   ;;  %v1581_v2 = vld [vmem:[%s2167_s13 + $0x70] ss:$8 sps:$4 sm:$0xff]   ;;  %v1933_v3 = vmov 0   ;;  %v1603_v18 = vld [vmem:[%s2160_s29] sm:$0xff]  }
  0x8e   : > { %545 = vmatprep.mubr.bf16.mxu0 %v1933_v3  ;;  %585 = vmatprep.mubr.bf16.mxu1 %v1933_v3  ;;  %v1582_v4 = vld [vmem:[%s2167_s13 + $0x64] ss:$8 sps:$4 sm:$0xff]   ;;  %v1584_v5 = vld [vmem:[%s2167_s13 + $0x60] ss:$8 sps:$4 sm:$0xff]   ;;  %v1585_v6 = vld [vmem:[%s2167_s13 + $0x54] ss:$8 sps:$4 sm:$0xff]  }
  0x8f   : > { %513 = vmatprep.subr.bf16.mxu0 %v1579_v1  ;;  %1418 = vmatprep.subr.bf16.mxu1 %v1579_v1  ;;  %v1587_v7 = vld [vmem:[%s2167_s13 + $0x50] ss:$8 sps:$4 sm:$0xff]   ;;  %v1588_v8 = vld [vmem:[%s2167_s13 + $0x44] ss:$8 sps:$4 sm:$0xff]   ;;  %v1590_v9 = vld [vmem:[%s2167_s13 + $0x40] ss:$8 sps:$4 sm:$0xff]  }
  0x90   : > { %514 = vmatpush1.bf16.msra.mxu0 %v1581_v2  ;;  %1426 = vmatpush1.bf16.msra.mxu1 %v1581_v2  ;;  %v1591_v10 = vld [vmem:[%s2167_s13 + $0x34] ss:$8 sps:$4 sm:$0xff]   ;;  %v1593_v11 = vld [vmem:[%s2167_s13 + $0x30] ss:$8 sps:$4 sm:$0xff]   ;;  %v1594_v12 = vld [vmem:[%s2167_s13 + $0x24] ss:$8 sps:$4 sm:$0xff]  }
  0x91   : > { %515 = vmatprep.subr.bf16.mxu0 %v1582_v4  ;;  %1419 = vmatprep.subr.bf16.mxu1 %v1582_v4  ;;  %v1596_v13 = vld [vmem:[%s2167_s13 + $0x20] ss:$8 sps:$4 sm:$0xff]   ;;  %v1597_v14 = vld [vmem:[%s2167_s13 + $0x14] ss:$8 sps:$4 sm:$0xff]   ;;  %v1599_v15 = vld [vmem:[%s2167_s13 + $0x10] ss:$8 sps:$4 sm:$0xff]  }
  0x92   : > { %v1600_v16 = vld [vmem:[%s2167_s13 + $0x4] ss:$8 sps:$4 sm:$0xff]   ;;  %v1602_v17 = vld [vmem:[%s2167_s13] ss:$8 sps:$4 sm:$0xff]   ;;  %v1607_v22 = vld [vmem:[%s2160_s29 + $0x10] sm:$0xff]   ;;  %p1315_p12 = scmp.ne.s32.totalorder %s1907_s24, 1 }
  0x93   : > { %v1604_v19 = vld [vmem:[%s2160_s29 + $0x20] sm:$0xff]   ;;  %v1605_v20 = vld [vmem:[%s2160_s29 + $0x8] sm:$0xff]   ;;  %v1608_v23 = vld [vmem:[%s2160_s29 + $0x30] sm:$0xff]  }
  0x94   : > { %516 = vmatpush1.bf16.msra.mxu0 %v1584_v5  ;;  %1427 = vmatpush1.bf16.msra.mxu1 %v1584_v5  ;;  %v1606_v21 = vld [vmem:[%s2160_s29 + $0x28] sm:$0xff]   ;;  %v1609_v24 = vld [vmem:[%s2160_s29 + $0x18] sm:$0xff]   ;;  %v321_v26 = vld [vmem:[#allocation2 + $0xb0] sm:$0xff] }
  0x95   : > { %517 = vmatprep.subr.bf16.mxu0 %v1585_v6  ;;  %1420 = vmatprep.subr.bf16.mxu1 %v1585_v6  ;;  %v1610_v25 = vld [vmem:[%s2160_s29 + $0x38] sm:$0xff]   ;;  %v322_v30 = vld [vmem:[#allocation2] sm:$0xff]  ;;  %v340_v43 = vld [vmem:[#allocation2 + $0xc8] sm:$0xff] }
  0x96   : > { %v337_v27 = vld [vmem:[#allocation2 + $0x38] sm:$0xff]  ;;  %v339_v37 = vld [vmem:[#allocation2 + $0x40] sm:$0xff]  ;;  %v325_v48 = vld [vmem:[#allocation2 + $0x50] sm:$0xff] }
  0x97   : > { %v338_v31 = vld [vmem:[#allocation2 + $0x58] sm:$0xff]  ;;  %v341_v49 = vld [vmem:[#allocation2 + $0xe0] sm:$0xff]  ;;  %v326_v54 = vld [vmem:[#allocation2 + $0x68] sm:$0xff] }
  0x98   : > { %518 = vmatpush1.bf16.msra.mxu0 %v1587_v7  ;;  %1428 = vmatpush1.bf16.msra.mxu1 %v1587_v7  ;;  %v323_v36 = vld [vmem:[#allocation2 + $0xd8] sm:$0xff]  ;;  %v342_v55 = vld [vmem:[#allocation2 + $0x90] sm:$0xff]  ;;  %v328_v2 = vld [vmem:[#allocation2 + $0x48] sm:$0xff] }
  0x99   : > { %519 = vmatprep.subr.bf16.mxu0 %v1588_v8  ;;  %1421 = vmatprep.subr.bf16.mxu1 %v1588_v8  ;;  %v324_v42 = vld [vmem:[#allocation2 + $0x18] sm:$0xff]  ;;  %v327_v60 = vld [vmem:[#allocation2 + $0x30] sm:$0xff]  ;;  %v329_v8 = vld [vmem:[#allocation2 + $0x80] sm:$0xff] }
  0x9a   : > { %v343_v61 = vld [vmem:[#allocation2 + $0x70] sm:$0xff] }
  0x9c   : > { %520 = vmatpush1.bf16.msra.mxu0 %v1590_v9  ;;  %1429 = vmatpush1.bf16.msra.mxu1 %v1590_v9  ;;  %v345_v9 = vld [vmem:[#allocation2 + $0xa8] sm:$0xff] }
  0x9d   : > { %521 = vmatprep.subr.bf16.mxu0 %v1591_v10  ;;  %1422 = vmatprep.subr.bf16.mxu1 %v1591_v10 }
  0xa0   : > { %522 = vmatpush1.bf16.msra.mxu0 %v1593_v11  ;;  %1430 = vmatpush1.bf16.msra.mxu1 %v1593_v11 }
  0xa1   : > { %523 = vmatprep.subr.bf16.mxu0 %v1594_v12  ;;  %1423 = vmatprep.subr.bf16.mxu1 %v1594_v12 }
  0xa4   : > { %524 = vmatpush1.bf16.msra.mxu0 %v1596_v13  ;;  %1431 = vmatpush1.bf16.msra.mxu1 %v1596_v13 }
  0xa5   : > { %525 = vmatprep.subr.bf16.mxu0 %v1597_v14  ;;  %1424 = vmatprep.subr.bf16.mxu1 %v1597_v14  ;;  %v330_v14 = vld [vmem:[#allocation2 + $0x88] sm:$0xff] }
  0xa8   : > { %526 = vmatpush1.bf16.msra.mxu0 %v1599_v15  ;;  %1432 = vmatpush1.bf16.msra.mxu1 %v1599_v15  ;;  %v346_v15 = vld [vmem:[#allocation2 + $0xd0] sm:$0xff] }
  0xa9   : > { %527 = vmatprep.subr.bf16.mxu0 %v1600_v16  ;;  %1425 = vmatprep.subr.bf16.mxu1 %v1600_v16 }
  0xac   : > { %528 = vmatpush1.bf16.msra.mxu0 %v1602_v17  ;;  %1433 = vmatpush1.bf16.msra.mxu1 %v1602_v17 }
  0xaf   : > { %546 = vmatmul.mubr.bf16.vlgmr.msra.gmra.mxu0 %v1603_v18  ;;  %586 = vmatmul.mubr.bf16.vlgmr.msra.gmra.mxu1 %v1604_v19 }
  0xb0   : > { %555 = vmatprep.mubr.bf16.mxu0 %v1933_v3  ;;  %595 = vmatprep.mubr.bf16.mxu1 %v1933_v3 }
  0xb7   : > { %556 = vmatmul.mubr.bf16.gmra.mxu0 %v1605_v20  ;;  %596 = vmatmul.mubr.bf16.gmra.mxu1 %v1606_v21  ;;  %v331_v20 = vld [vmem:[#allocation2 + $0xe8] sm:$0xff]  ;;  %v347_v21 = vld [vmem:[#allocation2 + $0x10] sm:$0xff] }
  0xb8   : > { %565 = vmatprep.mubr.bf16.mxu0 %v1933_v3  ;;  %605 = vmatprep.mubr.bf16.mxu1 %v1933_v3 }
  0xbf   : > { %566 = vmatmul.mubr.bf16.gmra.mxu0 %v1607_v22  ;;  %606 = vmatmul.mubr.bf16.gmra.mxu1 %v1608_v23 }
  0xc0   : > { %575 = vmatprep.mubr.bf16.mxu0 %v1933_v3  ;;  %615 = vmatprep.mubr.bf16.mxu1 %v1933_v3  ;;  %v344_v3 = vld [vmem:[#allocation2 + $0xc0] sm:$0xff] }
  0xc7   : > { %576 = vmatmul.mubr.bf16.gmra.mxu0 %v1609_v24  ;;  %616 = vmatmul.mubr.bf16.gmra.mxu1 %v1610_v25 }
 0x16f   : > { %v547_v28 = vpop.f32.mrf.mxu0  ;;  %v587_v29 = vpop.f32.mrf.mxu1 }
 0x170   : > { %v626_v32 = vadd.f32 %v547_v28, %v321_v26  ;;  %v642_v33 = vadd.f32 %v587_v29, %v337_v27  ;;  %v332_v26 = vld [vmem:[#allocation2 + $0xb8] sm:$0xff]  ;;  %v348_v27 = vld [vmem:[#allocation2 + $0x28] sm:$0xff] }
 0x171   : > { %v549_v34 = vpop.f32.mrf.mxu0  ;;  %v589_v35 = vpop.f32.mrf.mxu1 }
 0x172   : > { %658 = vst [vmem:[#allocation2 + $0xb0] sm:$0xff] %v626_v32  ;;  %674 = vst [vmem:[#allocation2 + $0x38] sm:$0xff] %v642_v33  ;;  %v627_v38 = vadd.f32 %v549_v34, %v322_v30  ;;  %v643_v39 = vadd.f32 %v589_v35, %v338_v31  ;;  %v333_v32 = vld [vmem:[#allocation2 + $0x60] sm:$0xff] }
 0x173   : > { %v551_v40 = vpop.f32.mrf.mxu0  ;;  %v591_v41 = vpop.f32.mrf.mxu1  ;;  %v349_v33 = vld [vmem:[#allocation2 + $0xa0] sm:$0xff] }
 0x174   : > { %659 = vst [vmem:[#allocation2] sm:$0xff] %v627_v38  ;;  %675 = vst [vmem:[#allocation2 + $0x58] sm:$0xff] %v643_v39  ;;  %v628_v44 = vadd.f32 %v551_v40, %v323_v36  ;;  %v644_v45 = vadd.f32 %v591_v41, %v339_v37  ;;  %v334_v38 = vld [vmem:[#allocation2 + $0xf0] sm:$0xff]  ;;  %v350_v39 = vld [vmem:[#allocation2 + $0xf8] sm:$0xff] }
 0x175   : > { %v553_v46 = vpop.f32.mrf.mxu0  ;;  %v593_v47 = vpop.f32.mrf.mxu1 }
 0x176   : > { %660 = vst [vmem:[#allocation2 + $0xd8] sm:$0xff] %v628_v44  ;;  %676 = vst [vmem:[#allocation2 + $0x40] sm:$0xff] %v644_v45  ;;  %v629_v50 = vadd.f32 %v553_v46, %v324_v42  ;;  %v645_v51 = vadd.f32 %v593_v47, %v340_v43  ;;  %v335_v44 = vld [vmem:[#allocation2 + $0x8] sm:$0xff]  ;;  %v351_v45 = vld [vmem:[#allocation2 + $0x20] sm:$0xff] }
 0x177   : > { %v557_v52 = vpop.f32.mrf.mxu0  ;;  %v597_v53 = vpop.f32.mrf.mxu1 }
 0x178   : > { %661 = vst [vmem:[#allocation2 + $0x18] sm:$0xff] %v629_v50  ;;  %677 = vst [vmem:[#allocation2 + $0xc8] sm:$0xff] %v645_v51  ;;  %v630_v56 = vadd.f32 %v557_v52, %v325_v48  ;;  %v646_v57 = vadd.f32 %v597_v53, %v341_v49  ;;  %v336_v50 = vld [vmem:[#allocation2 + $0x78] sm:$0xff] }
 0x179   : > { %v559_v58 = vpop.f32.mrf.mxu0  ;;  %v599_v59 = vpop.f32.mrf.mxu1  ;;  %v352_v51 = vld [vmem:[#allocation2 + $0x98] sm:$0xff] }
 0x17a   : > { %662 = vst [vmem:[#allocation2 + $0x50] sm:$0xff] %v630_v56  ;;  %678 = vst [vmem:[#allocation2 + $0xe0] sm:$0xff] %v646_v57  ;;  %v631_v62 = vadd.f32 %v559_v58, %v326_v54  ;;  %v647_v63 = vadd.f32 %v599_v59, %v342_v55 }
 0x17b   : > { %v561_v0 = vpop.f32.mrf.mxu0  ;;  %v601_v1 = vpop.f32.mrf.mxu1 }
 0x17c   : > { %663 = vst [vmem:[#allocation2 + $0x68] sm:$0xff] %v631_v62  ;;  %679 = vst [vmem:[#allocation2 + $0x90] sm:$0xff] %v647_v63  ;;  %v632_v4 = vadd.f32 %v561_v0, %v327_v60  ;;  %v648_v5 = vadd.f32 %v601_v1, %v343_v61 }
 0x17d   : > { %v563_v6 = vpop.f32.mrf.mxu0  ;;  %v603_v7 = vpop.f32.mrf.mxu1 }
 0x17e   : > { %664 = vst [vmem:[#allocation2 + $0x30] sm:$0xff] %v632_v4  ;;  %680 = vst [vmem:[#allocation2 + $0x70] sm:$0xff] %v648_v5  ;;  %v633_v10 = vadd.f32 %v563_v6, %v328_v2  ;;  %v649_v11 = vadd.f32 %v603_v7, %v344_v3 }
 0x17f   : > { %v567_v12 = vpop.f32.mrf.mxu0  ;;  %v607_v13 = vpop.f32.mrf.mxu1 }
 0x180   : > { %665 = vst [vmem:[#allocation2 + $0x48] sm:$0xff] %v633_v10  ;;  %681 = vst [vmem:[#allocation2 + $0xc0] sm:$0xff] %v649_v11  ;;  %v634_v16 = vadd.f32 %v567_v12, %v329_v8  ;;  %v650_v17 = vadd.f32 %v607_v13, %v345_v9 }
 0x181   : > { %v569_v18 = vpop.f32.mrf.mxu0  ;;  %v609_v19 = vpop.f32.mrf.mxu1 }
 0x182   : > { %666 = vst [vmem:[#allocation2 + $0x80] sm:$0xff] %v634_v16  ;;  %682 = vst [vmem:[#allocation2 + $0xa8] sm:$0xff] %v650_v17  ;;  %v635_v22 = vadd.f32 %v569_v18, %v330_v14  ;;  %v651_v23 = vadd.f32 %v609_v19, %v346_v15 }
 0x183   : > { %v571_v24 = vpop.f32.mrf.mxu0  ;;  %v611_v25 = vpop.f32.mrf.mxu1 }
 0x184   : > { %667 = vst [vmem:[#allocation2 + $0x88] sm:$0xff] %v635_v22  ;;  %683 = vst [vmem:[#allocation2 + $0xd0] sm:$0xff] %v651_v23  ;;  %v636_v28 = vadd.f32 %v571_v24, %v331_v20  ;;  %v652_v29 = vadd.f32 %v611_v25, %v347_v21 }
 0x185   : > { %v573_v30 = vpop.f32.mrf.mxu0  ;;  %v613_v31 = vpop.f32.mrf.mxu1 }
 0x186   : > { %668 = vst [vmem:[#allocation2 + $0xe8] sm:$0xff] %v636_v28  ;;  %684 = vst [vmem:[#allocation2 + $0x10] sm:$0xff] %v652_v29  ;;  %v637_v34 = vadd.f32 %v573_v30, %v332_v26  ;;  %v653_v35 = vadd.f32 %v613_v31, %v348_v27 }
 0x187   : > { %v577_v36 = vpop.f32.mrf.mxu0  ;;  %v617_v37 = vpop.f32.mrf.mxu1 }
 0x188   : > { %669 = vst [vmem:[#allocation2 + $0xb8] sm:$0xff] %v637_v34  ;;  %685 = vst [vmem:[#allocation2 + $0x28] sm:$0xff] %v653_v35  ;;  %v638_v40 = vadd.f32 %v577_v36, %v333_v32  ;;  %v654_v41 = vadd.f32 %v617_v37, %v349_v33 }
 0x189   : > { %v579_v42 = vpop.f32.mrf.mxu0  ;;  %v619_v43 = vpop.f32.mrf.mxu1 }
 0x18a   : > { %670 = vst [vmem:[#allocation2 + $0x60] sm:$0xff] %v638_v40  ;;  %686 = vst [vmem:[#allocation2 + $0xa0] sm:$0xff] %v654_v41  ;;  %v639_v46 = vadd.f32 %v579_v42, %v334_v38  ;;  %v655_v47 = vadd.f32 %v619_v43, %v350_v39 }
 0x18b   : > { %v581_v48 = vpop.f32.mrf.mxu0  ;;  %v621_v49 = vpop.f32.mrf.mxu1 }
 0x18c   : > { %671 = vst [vmem:[#allocation2 + $0xf0] sm:$0xff] %v639_v46  ;;  %687 = vst [vmem:[#allocation2 + $0xf8] sm:$0xff] %v655_v47  ;;  %v640_v52 = vadd.f32 %v581_v48, %v335_v44  ;;  %v656_v53 = vadd.f32 %v621_v49, %v351_v45  ;;  %693 = sbr.rel (%p1315_p12) target bundleno = 790 (0x316), region = 52 }
 0x18d   : > { %v583_v54 = vpop.f32.mrf.mxu0  ;;  %v623_v55 = vpop.f32.mrf.mxu1 }
 0x18e   : > { %672 = vst [vmem:[#allocation2 + $0x8] sm:$0xff] %v640_v52  ;;  %688 = vst [vmem:[#allocation2 + $0x20] sm:$0xff] %v656_v53  ;;  %v641_v56 = vadd.f32 %v583_v54, %v336_v50  ;;  %v657_v57 = vadd.f32 %v623_v55, %v352_v51 }
 0x190   : > { %673 = vst [vmem:[#allocation2 + $0x78] sm:$0xff] %v641_v56  ;;  %689 = vst [vmem:[#allocation2 + $0x98] sm:$0xff] %v657_v57 }
 0x191   : > { %v1611_v58 = vld [vmem:[%s2374_s3 + $0x78] sm:$0xff]   ;;  %v1613_v60 = vld [vmem:[%s2374_s3 + $0x70] sm:$0xff]   ;;  %v1615_v62 = vld [vmem:[%s2374_s3 + $0x68] sm:$0xff]   ;;  %v728_v63 = vlaneseq }
 0x192   : > { %v1612_v59 = vld [vmem:[%s2374_s3 + $0x38] sm:$0xff]   ;;  %1354 = vmatprep.subr.bf16.mxu0 %v1611_v58  ;;  %1434 = vmatprep.subr.bf16.mxu1 %v1611_v58  ;;  %v1614_v61 = vld [vmem:[%s2374_s3 + $0x30] sm:$0xff]   ;;  %v1616_v0 = vld [vmem:[%s2374_s3 + $0x28] sm:$0xff]  }
 0x193   : > { %1355 = vmatpush3.bf16.msra.mxu0 %v1612_v59  ;;  %1442 = vmatpush3.bf16.msra.mxu1 %v1612_v59  ;;  %v1617_v1 = vld [vmem:[%s2374_s3 + $0x60] sm:$0xff]   ;;  %v729_v2 = vshrl.u32 %v728_v63, 7  ;;  %v1619_v4 = vld [vmem:[%s2374_s3 + $0x58] sm:$0xff]   ;;  %v1621_v8 = vld [vmem:[%s2374_s3 + $0x50] sm:$0xff]  }
 0x194   : > { %1356 = vmatprep.subr.bf16.mxu0 %v1613_v60  ;;  %1435 = vmatprep.subr.bf16.mxu1 %v1613_v60  ;;  %v1618_v3 = vld [vmem:[%s2374_s3 + $0x20] sm:$0xff]   ;;  %v1620_v7 = vld [vmem:[%s2374_s3 + $0x18] sm:$0xff]   ;;  %v694_v14 = vld [vmem:[#allocation2 + $0xb0] sm:$0xff] }
 0x195   : > { %v730_v5 = vsub.s32 0, %v729_v2  ;;  %v734_v6 = vsub.s32 1, %v729_v2  ;;  %v695_v9 = vld [vmem:[#allocation2] sm:$0xff]  ;;  %v697_v10 = vld [vmem:[#allocation2 + $0x18] sm:$0xff]  ;;  %v699_v16 = vld [vmem:[#allocation2 + $0x68] sm:$0xff] }
 0x196   : > { %v726_v11 = vld [vmem:[%s2373_s2] sm:$0x3]  ;;  %v696_v15 = vld [vmem:[#allocation2 + $0xd8] sm:$0xff]  ;;  %v701_v17 = vld [vmem:[#allocation2 + $0x48] sm:$0xff] }
 0x197   : > { %1357 = vmatpush3.bf16.msra.mxu0 %v1614_v61  ;;  %1443 = vmatpush3.bf16.msra.mxu1 %v1614_v61  ;;  %v2248_v12 = vrot.slane %v726_v11, %v730_v5  ;;  %v2250_v13 = vrot.slane %v726_v11, %v734_v6  ;;  %v698_v18 = vld [vmem:[#allocation2 + $0x50] sm:$0xff]  ;;  %v703_v25 = vld [vmem:[#allocation2 + $0x88] sm:$0xff]  ;;  %v705_v26 = vld [vmem:[#allocation2 + $0xb8] sm:$0xff] }
 0x198   : > { %1358 = vmatprep.subr.bf16.mxu0 %v1615_v62  ;;  %1436 = vmatprep.subr.bf16.mxu1 %v1615_v62  ;;  %v700_v19 = vld [vmem:[#allocation2 + $0x30] sm:$0xff]  ;;  %v1623_v27 = vld [vmem:[%s2374_s3 + $0x48] sm:$0xff]   ;;  %v711_v37 = vld [vmem:[#allocation2 + $0x58] sm:$0xff] }
 0x199   : > { %v1622_v20 = vld [vmem:[%s2374_s3 + $0x10] sm:$0xff]   ;;  %v739_v21 = vadd.f32 %v2250_v13, %v695_v9  ;;  %v741_v22 = vadd.f32 %v2250_v13, %v697_v10  ;;  %v738_v23 = vadd.f32 %v2248_v12, %v694_v14  ;;  %v740_v24 = vadd.f32 %v2248_v12, %v696_v15  ;;  %v713_v38 = vld [vmem:[#allocation2 + $0xc8] sm:$0xff]  ;;  %v710_v40 = vld [vmem:[#allocation2 + $0x38] sm:$0xff] }
 0x19a   : > { %v743_v28 = vadd.f32 %v2250_v13, %v699_v16  ;;  %v745_v29 = vadd.f32 %v2250_v13, %v701_v17  ;;  %v742_v32 = vadd.f32 %v2248_v12, %v698_v18  ;;  %v744_v33 = vadd.f32 %v2248_v12, %v700_v19  ;;  %v1624_v39 = vld [vmem:[%s2374_s3 + $0x8] sm:$0xff]   ;;  %v712_v41 = vld [vmem:[#allocation2 + $0x40] sm:$0xff]  ;;  %v715_v43 = vld [vmem:[#allocation2 + $0x90] sm:$0xff] }
 0x19b   : > { %1359 = vmatpush3.bf16.msra.mxu0 %v1616_v0  ;;  %1444 = vmatpush3.bf16.msra.mxu1 %v1616_v0  ;;  %v771_v30 = vpack.c.bf16 %v741_v22, %v739_v21  ;;  %v770_v31 = vpack.c.bf16 %v740_v24, %v738_v23  ;;  %v747_v35 = vadd.f32 %v2250_v13, %v703_v25  ;;  %v1625_v42 = vld [vmem:[%s2374_s3 + $0x40] sm:$0xff]   ;;  %v704_v47 = vld [vmem:[#allocation2 + $0xe8] sm:$0xff]  ;;  %v707_v51 = vld [vmem:[#allocation2 + $0xf0] sm:$0xff] }
 0x19c   : > { %1360 = vmatprep.subr.bf16.mxu0 %v1617_v1  ;;  %1437 = vmatprep.subr.bf16.mxu1 %v1617_v1  ;;  %v773_v34 = vpack.c.bf16 %v745_v29, %v743_v28  ;;  %v749_v36 = vadd.f32 %v2250_v13, %v705_v26  ;;  %v717_v44 = vld [vmem:[#allocation2 + $0xc0] sm:$0xff]  ;;  %v772_v45 = vpack.c.bf16 %v744_v33, %v742_v32  ;;  %v709_v52 = vld [vmem:[#allocation2 + $0x78] sm:$0xff]  ;;  %v716_v60 = vld [vmem:[#allocation2 + $0x70] sm:$0xff] }
 0x19d   : > { %1627 = vtanh.bf16 %v771_v30  ;;  %v702_v46 = vld [vmem:[#allocation2 + $0x80] sm:$0xff]  ;;  %v755_v48 = vadd.f32 %v2250_v13, %v711_v37  ;;  %v757_v49 = vadd.f32 %v2250_v13, %v713_v38  ;;  %v754_v53 = vadd.f32 %v2248_v12, %v710_v40  ;;  %v719_v0 = vld [vmem:[#allocation2 + $0xd0] sm:$0xff]  ;;  %v721_v1 = vld [vmem:[#allocation2 + $0x28] sm:$0xff] }
 0x19e   : > { %1629 = vtanh.bf16 %v770_v31  ;;  %v775_v50 = vpack.c.bf16 %v749_v36, %v747_v35  ;;  %v756_v54 = vadd.f32 %v2248_v12, %v712_v41  ;;  %v1626_v55 = vld [vmem:[%s2374_s3] sm:$0xff]   ;;  %v759_v57 = vadd.f32 %v2250_v13, %v715_v43  ;;  %v708_v14 = vld [vmem:[#allocation2 + $0x8] sm:$0xff]  ;;  %v720_v18 = vld [vmem:[#allocation2 + $0x10] sm:$0xff] }
 0x19f   : > { %1361 = vmatpush3.bf16.msra.mxu0 %v1618_v3  ;;  %1445 = vmatpush3.bf16.msra.mxu1 %v1618_v3  ;;  %1631 = vtanh.bf16 %v773_v34  ;;  %v779_v56 = vpack.c.bf16 %v757_v49, %v755_v48  ;;  %v761_v58 = vadd.f32 %v2250_v13, %v717_v44  ;;  %v714_v59 = vld [vmem:[#allocation2 + $0xe0] sm:$0xff]  ;;  %v746_v61 = vadd.f32 %v2248_v12, %v702_v46  ;;  %v718_v17 = vld [vmem:[#allocation2 + $0xa8] sm:$0xff]  ;;  %v723_v19 = vld [vmem:[#allocation2 + $0xf8] sm:$0xff] }
 0x1a0   : > { %1362 = vmatprep.subr.bf16.mxu0 %v1619_v4  ;;  %1438 = vmatprep.subr.bf16.mxu1 %v1619_v4  ;;  %v748_v62 = vadd.f32 %v2248_v12, %v704_v47  ;;  %v778_v63 = vpack.c.bf16 %v756_v54, %v754_v53  ;;  %1633 = vtanh.bf16 %v772_v45  ;;  %v751_v2 = vadd.f32 %v2250_v13, %v707_v51  ;;  %v706_v11 = vld [vmem:[#allocation2 + $0x60] sm:$0xff] }
 0x1a1   : > { %v753_v3 = vadd.f32 %v2250_v13, %v709_v52  ;;  %v781_v4 = vpack.c.bf16 %v761_v58, %v759_v57  ;;  %1635 = vtanh.bf16 %v775_v50  ;;  %v758_v5 = vadd.f32 %v2248_v12, %v714_v59  ;;  %v722_v34 = vld [vmem:[#allocation2 + $0xa0] sm:$0xff] }
 0x1a2   : > { %v760_v6 = vadd.f32 %v2248_v12, %v716_v60  ;;  %1637 = vtanh.bf16 %v779_v56  ;;  %v774_v9 = vpack.c.bf16 %v748_v62, %v746_v61  ;;  %v750_v22 = vadd.f32 %v2248_v12, %v706_v11  ;;  %v724_v35 = vld [vmem:[#allocation2 + $0x20] sm:$0xff] }
 0x1a3   : > { %1363 = vmatpush3.bf16.msra.mxu0 %v1620_v7  ;;  %1446 = vmatpush3.bf16.msra.mxu1 %v1620_v7  ;;  %v763_v7 = vadd.f32 %v2250_v13, %v719_v0  ;;  %1639 = vtanh.bf16 %v778_v63  ;;  %v777_v10 = vpack.c.bf16 %v753_v3, %v751_v2  ;;  %v752_v23 = vadd.f32 %v2248_v12, %v708_v14 }
 0x1a4   : > { %1364 = vmatprep.subr.bf16.mxu0 %v1621_v8  ;;  %1439 = vmatprep.subr.bf16.mxu1 %v1621_v8  ;;  %v765_v8 = vadd.f32 %v2250_v13, %v721_v1  ;;  %1641 = vtanh.bf16 %v781_v4  ;;  %v780_v15 = vpack.c.bf16 %v760_v6, %v758_v5  ;;  %v762_v25 = vadd.f32 %v2248_v12, %v718_v17 }
 0x1a5   : > { %1643 = vtanh.bf16 %v774_v9  ;;  %v764_v26 = vadd.f32 %v2248_v12, %v720_v18  ;;  %v767_v28 = vadd.f32 %v2250_v13, %v723_v19  ;;  %v776_v30 = vpack.c.bf16 %v752_v23, %v750_v22 }
 0x1a6   : > { %v783_v16 = vpack.c.bf16 %v765_v8, %v763_v7  ;;  %1645 = vtanh.bf16 %v777_v10  ;;  %v768_v40 = vadd.f32 %v2248_v12, %v724_v35 }
 0x1a7   : > { %1365 = vmatpush3.bf16.msra.mxu0 %v1622_v20  ;;  %1447 = vmatpush3.bf16.msra.mxu1 %v1622_v20  ;;  %v725_v20 = vld [vmem:[#allocation2 + $0x98] sm:$0xff]  ;;  %1647 = vtanh.bf16 %v780_v15  ;;  %v782_v31 = vpack.c.bf16 %v764_v26, %v762_v25 }
 0x1a8   : > { %1366 = vmatprep.subr.bf16.mxu0 %v1623_v27  ;;  %1440 = vmatprep.subr.bf16.mxu1 %v1623_v27  ;;  %1649 = vtanh.bf16 %v783_v16  ;;  %v769_v29 = vadd.f32 %v2250_v13, %v725_v20 }
 0x1a9   : > { %1651 = vtanh.bf16 %v776_v30 }
 0x1aa   : > { %v785_v33 = vpack.c.bf16 %v769_v29, %v767_v28  ;;  %1653 = vtanh.bf16 %v782_v31 }
 0x1ab   : > { %1367 = vmatpush3.bf16.msra.mxu0 %v1624_v39  ;;  %1448 = vmatpush3.bf16.msra.mxu1 %v1624_v39  ;;  %v1628_v21 = vpop.eup %1627  ;;  %v766_v39 = vadd.f32 %v2248_v12, %v722_v34 }
 0x1ac   : > { %1368 = vmatprep.subr.bf16.mxu0 %v1625_v42  ;;  %1441 = vmatprep.subr.bf16.mxu1 %v1625_v42  ;;  %v1630_v24 = vpop.eup %1629  ;;  %1655 = vtanh.bf16 %v785_v33 }
 0x1ad   : > { %962 = vmatprep.mubr.bf16.mxu0 %v1628_v21  ;;  %v1632_v27 = vpop.eup %1631  ;;  %v784_v42 = vpack.c.bf16 %v768_v40, %v766_v39 }
 0x1ae   : > { %v1634_v32 = vpop.eup %1633 }
 0x1af   : > { %1369 = vmatpush3.bf16.msra.mxu0 %v1626_v55  ;;  %1449 = vmatpush3.bf16.msra.mxu1 %v1626_v55  ;;  %v1636_v36 = vpop.eup %1635  ;;  %1657 = vtanh.bf16 %v784_v42 }
 0x1b0   : > { %v1638_v37 = vpop.eup %1637 }
 0x1b1   : > { %v1640_v38 = vpop.eup %1639  ;;  %994 = vmatprep.mubr.bf16.mxu1 %v1638_v37 }
 0x1b2   : > { %963 = vmatmul.mubr.bf16.vlgmr.msra.gmra.mxu0 %v1630_v24  ;;  %v1642_v41 = vpop.eup %1641  ;;  %995 = vmatmul.mubr.bf16.vlgmr.msra.gmra.mxu1 %v1640_v38 }
 0x1b3   : > { %970 = vmatprep.mubr.bf16.mxu0 %v1632_v27  ;;  %1002 = vmatprep.mubr.bf16.mxu1 %v1642_v41  ;;  %v1644_v13 = vpop.eup %1643 }
 0x1b4   : > { %v1646_v43 = vpop.eup %1645 }
 0x1b5   : > { %v1648_v44 = vpop.eup %1647 }
 0x1b6   : > { %v1650_v45 = vpop.eup %1649 }
 0x1b7   : > { %v1652_v46 = vpop.eup %1651 }
 0x1b8   : > { %v1654_v47 = vpop.eup %1653 }
 0x1ba   : > { %971 = vmatmul.mubr.bf16.gmra.mxu0 %v1634_v32  ;;  %1003 = vmatmul.mubr.bf16.gmra.mxu1 %v1648_v44  ;;  %v1656_v48 = vpop.eup %1655 }
 0x1bb   : > { %978 = vmatprep.mubr.bf16.mxu0 %v1636_v36  ;;  %1010 = vmatprep.mubr.bf16.mxu1 %v1650_v45 }
 0x1bd   : > { %v1658_v12 = vpop.eup %1657 }
 0x1c2   : > { %979 = vmatmul.mubr.bf16.gmra.mxu0 %v1644_v13  ;;  %1011 = vmatmul.mubr.bf16.gmra.mxu1 %v1654_v47 }
 0x1c3   : > { %986 = vmatprep.mubr.bf16.mxu0 %v1646_v43  ;;  %1018 = vmatprep.mubr.bf16.mxu1 %v1656_v48 }
 0x1ca   : > { %987 = vmatmul.mubr.bf16.gmra.mxu0 %v1652_v46  ;;  %1019 = vmatmul.mubr.bf16.gmra.mxu1 %v1658_v12 }
 0x272   : > { %v1370_v49 = vpop.f32.mrf.mxu0  ;;  %v1394_v57 = vpop.f32.mrf.mxu1 }
 0x274   : > { %v1371_v50 = vpop.f32.mrf.mxu0  ;;  %v1395_v60 = vpop.f32.mrf.mxu1 }
 0x275   : > { %v1372_v51 = vadd.f32 %v1371_v50, %v1370_v49  ;;  %v1396_v25 = vadd.f32 %v1395_v60, %v1394_v57 }
 0x276   : > { %v1373_v52 = vpop.f32.mrf.mxu0  ;;  %v1397_v63 = vpop.f32.mrf.mxu1 }
 0x277   : > { %v1332_v53 = vmul.f32 -1.442695, %v1372_v51  ;;  %v1340_v32 = vmul.f32 -1.442695, %v1396_v25 }
 0x278   : > { %v1374_v54 = vpop.f32.mrf.mxu0  ;;  %v1398_v2 = vpop.f32.mrf.mxu1 }
 0x279   : > { %1659 = vpow2.f32 %v1332_v53  ;;  %v1375_v55 = vadd.f32 %v1374_v54, %v1373_v52  ;;  %v1399_v37 = vadd.f32 %v1398_v2, %v1397_v63 }
 0x27a   : > { %v1376_v56 = vpop.f32.mrf.mxu0  ;;  %v1400_v5 = vpop.f32.mrf.mxu1 }
 0x27b   : > { %v1333_v58 = vmul.f32 -1.442695, %v1375_v55  ;;  %v1341_v42 = vmul.f32 -1.442695, %v1399_v37 }
 0x27c   : > { %v1377_v59 = vpop.f32.mrf.mxu0  ;;  %v1401_v8 = vpop.f32.mrf.mxu1 }
 0x27d   : > { %1661 = vpow2.f32 %v1333_v58  ;;  %v1378_v61 = vadd.f32 %v1377_v59, %v1376_v56  ;;  %v1402_v41 = vadd.f32 %v1401_v8, %v1400_v5 }
 0x27e   : > { %v1379_v62 = vpop.f32.mrf.mxu0  ;;  %v1403_v14 = vpop.f32.mrf.mxu1 }
 0x27f   : > { %v1334_v0 = vmul.f32 -1.442695, %v1378_v61  ;;  %v1342_v46 = vmul.f32 -1.442695, %v1402_v41 }
 0x280   : > { %v1380_v1 = vpop.f32.mrf.mxu0  ;;  %v1404_v18 = vpop.f32.mrf.mxu1 }
 0x281   : > { %1663 = vpow2.f32 %v1334_v0  ;;  %v1381_v3 = vadd.f32 %v1380_v1, %v1379_v62  ;;  %v1405_v12 = vadd.f32 %v1404_v18, %v1403_v14 }
 0x282   : > { %v1382_v4 = vpop.f32.mrf.mxu0  ;;  %v1406_v26 = vpop.f32.mrf.mxu1 }
 0x283   : > { %v1335_v6 = vmul.f32 -1.442695, %v1381_v3  ;;  %v1343_v53 = vmul.f32 -1.442695, %v1405_v12 }
 0x284   : > { %v1383_v7 = vpop.f32.mrf.mxu0  ;;  %v1407_v34 = vpop.f32.mrf.mxu1 }
 0x285   : > { %1665 = vpow2.f32 %v1335_v6  ;;  %v1384_v9 = vadd.f32 %v1383_v7, %v1382_v4  ;;  %v1408_v54 = vadd.f32 %v1407_v34, %v1406_v26 }
 0x286   : > { %v1660_v10 = vpop.eup %1659  ;;  %v1385_v11 = vpop.f32.mrf.mxu0 }
 0x287   : > { %v1336_v15 = vmul.f32 -1.442695, %v1384_v9  ;;  %v1075_v16 = vadd.f32 1.0, %v1660_v10  ;;  %v1409_v40 = vpop.f32.mrf.mxu1  ;;  %v1344_v60 = vmul.f32 -1.442695, %v1408_v54 }
 0x288   : > { %v1386_v17 = vpop.f32.mrf.mxu0 }
 0x289   : > { %1667 = vpow2.f32 %v1336_v15  ;;  %v1387_v19 = vadd.f32 %v1386_v17, %v1385_v11  ;;  %v1410_v45 = vpop.f32.mrf.mxu1 }
 0x28a   : > { %v1662_v20 = vpop.eup %1661  ;;  %v1388_v21 = vpop.f32.mrf.mxu0  ;;  %1669 = vrcp.f32 %v1075_v16  ;;  %v1411_v61 = vadd.f32 %v1410_v45, %v1409_v40 }
 0x28b   : > { %v1076_v22 = vadd.f32 1.0, %v1662_v20  ;;  %v1337_v23 = vmul.f32 -1.442695, %v1387_v19  ;;  %v1412_v50 = vpop.f32.mrf.mxu1 }
 0x28c   : > { %v1389_v24 = vpop.f32.mrf.mxu0  ;;  %v1345_v3 = vmul.f32 -1.442695, %v1411_v61 }
 0x28d   : > { %1671 = vrcp.f32 %v1076_v22  ;;  %v1390_v27 = vadd.f32 %v1389_v24, %v1388_v21  ;;  %v1413_v56 = vpop.f32.mrf.mxu1 }
 0x28e   : > { %v1664_v28 = vpop.eup %1663  ;;  %1673 = vpow2.f32 %v1337_v23  ;;  %v1391_v29 = vpop.f32.mrf.mxu0  ;;  %v1414_v4 = vadd.f32 %v1413_v56, %v1412_v50 }
 0x28f   : > { %v1077_v30 = vadd.f32 1.0, %v1664_v28  ;;  %v1338_v31 = vmul.f32 -1.442695, %v1390_v27  ;;  %v1415_v63 = vpop.f32.mrf.mxu1 }
 0x290   : > { %v1392_v33 = vpop.f32.mrf.mxu0  ;;  %v1346_v9 = vmul.f32 -1.442695, %v1414_v4 }
 0x291   : > { %1675 = vrcp.f32 %v1077_v30  ;;  %v1393_v35 = vadd.f32 %v1392_v33, %v1391_v29  ;;  %v1416_v5 = vpop.f32.mrf.mxu1 }
 0x292   : > { %v1666_v36 = vpop.eup %1665  ;;  %1677 = vpow2.f32 %v1338_v31  ;;  %v1417_v10 = vadd.f32 %v1416_v5, %v1415_v63 }
 0x293   : > { %v1078_v38 = vadd.f32 1.0, %v1666_v36  ;;  %v1339_v39 = vmul.f32 -1.442695, %v1393_v35  ;;  %1679 = vpow2.f32 %v1340_v32 }
 0x294   : > { %v1347_v15 = vmul.f32 -1.442695, %v1417_v10 }
 0x295   : > { %1681 = vrcp.f32 %v1078_v38 }
 0x296   : > { %v1668_v13 = vpop.eup %1667  ;;  %1683 = vpow2.f32 %v1339_v39 }
 0x297   : > { %v1079_v43 = vadd.f32 1.0, %v1668_v13  ;;  %v1670_v44 = vpop.eup %1669 }
 0x298   : > { %1123 = vxpose.xlu0.b32.start [1/16] (narrow) %v1670_v44, 8 }
 0x299   : > { %1685 = vrcp.f32 %v1079_v43 }
 0x29a   : > { %v1672_v47 = vpop.eup %1671  ;;  %1687 = vpow2.f32 %v1341_v42 }
 0x29b   : > { %v1674_v48 = vpop.eup %1673  ;;  %1689 = vpow2.f32 %v1342_v46 }
 0x29c   : > { %v1080_v49 = vadd.f32 1.0, %v1674_v48  ;;  %1124 = vxpose.xlu0.b32.cont [2/16] (narrow) %v1672_v47, 8 }
 0x29e   : > { %v1676_v51 = vpop.eup %1675  ;;  %1691 = vrcp.f32 %v1080_v49 }
 0x29f   : > { %v1678_v52 = vpop.eup %1677 }
 0x2a0   : > { %v1081_v55 = vadd.f32 1.0, %v1678_v52  ;;  %v1680_v57 = vpop.eup %1679  ;;  %1125 = vxpose.xlu0.b32.cont [3/16] (narrow) %v1676_v51, 8 }
 0x2a1   : > { %v1083_v1 = vadd.f32 1.0, %v1680_v57 }
 0x2a2   : > { %v1682_v58 = vpop.eup %1681  ;;  %1693 = vrcp.f32 %v1081_v55 }
 0x2a3   : > { %v1684_v59 = vpop.eup %1683  ;;  %1695 = vpow2.f32 %v1343_v53 }
 0x2a4   : > { %v1082_v62 = vadd.f32 1.0, %v1684_v59  ;;  %1126 = vxpose.xlu0.b32.cont [4/16] (narrow) %v1682_v58, 8 }
 0x2a6   : > { %v1686_v0 = vpop.eup %1685  ;;  %1697 = vrcp.f32 %v1082_v62 }
 0x2a7   : > { %v1688_v2 = vpop.eup %1687  ;;  %1699 = vpow2.f32 %v1344_v60 }
 0x2a8   : > { %1127 = vxpose.xlu0.b32.cont [5/16] (narrow) %v1686_v0, 8  ;;  %v1690_v6 = vpop.eup %1689  ;;  %1701 = vrcp.f32 %v1083_v1  ;;  %v1084_v7 = vadd.f32 1.0, %v1688_v2 }
 0x2a9   : > { %1703 = vpow2.f32 %v1345_v3  ;;  %v1085_v11 = vadd.f32 1.0, %v1690_v6 }
 0x2aa   : > { %1705 = vrcp.f32 %v1084_v7 }
 0x2ab   : > { %v1692_v8 = vpop.eup %1691  ;;  %1707 = vpow2.f32 %v1346_v9 }
 0x2ac   : > { %1128 = vxpose.xlu0.b32.cont [6/16] (narrow) %v1692_v8, 8  ;;  %1709 = vrcp.f32 %v1085_v11 }
 0x2ad   : > { %1711 = vpow2.f32 %v1347_v15 }
 0x2af   : > { %v1694_v14 = vpop.eup %1693 }
 0x2b0   : > { %v1696_v16 = vpop.eup %1695  ;;  %1129 = vxpose.xlu0.b32.cont [7/16] (narrow) %v1694_v14, 8 }
 0x2b1   : > { %v1086_v18 = vadd.f32 1.0, %v1696_v16 }
 0x2b3   : > { %v1698_v17 = vpop.eup %1697  ;;  %1713 = vrcp.f32 %v1086_v18 }
 0x2b4   : > { %v1700_v19 = vpop.eup %1699  ;;  %1130 = vxpose.xlu0.b32.cont [8/16] (narrow) %v1698_v17, 8 }
 0x2b5   : > { %v1702_v20 = vpop.eup %1701  ;;  %v1087_v21 = vadd.f32 1.0, %v1700_v19 }
 0x2b6   : > { %v1704_v22 = vpop.eup %1703 }
 0x2b7   : > { %v1706_v23 = vpop.eup %1705  ;;  %1715 = vrcp.f32 %v1087_v21  ;;  %v1088_v24 = vadd.f32 1.0, %v1704_v22 }
 0x2b8   : > { %1131 = vxpose.xlu0.b32.cont [9/16] (narrow) %v1702_v20, 8  ;;  %v1708_v25 = vpop.eup %1707 }
 0x2b9   : > { %v1710_v26 = vpop.eup %1709  ;;  %1717 = vrcp.f32 %v1088_v24  ;;  %v1089_v27 = vadd.f32 1.0, %v1708_v25 }
 0x2ba   : > { %v1712_v28 = vpop.eup %1711 }
 0x2bb   : > { %1719 = vrcp.f32 %v1089_v27  ;;  %v1090_v29 = vadd.f32 1.0, %v1712_v28 }
 0x2bc   : > { %1132 = vxpose.xlu0.b32.cont [10/16] (narrow) %v1706_v23, 8 }
 0x2bd   : > { %1721 = vrcp.f32 %v1090_v29 }
 0x2c0   : > { %1133 = vxpose.xlu0.b32.cont [11/16] (narrow) %v1710_v26, 8  ;;  %v1714_v30 = vpop.eup %1713 }
 0x2c4   : > { %1134 = vxpose.xlu0.b32.cont [12/16] (narrow) %v1714_v30, 8  ;;  %v1716_v31 = vpop.eup %1715 }
 0x2c6   : > { %v1718_v32 = vpop.eup %1717 }
 0x2c8   : > { %1135 = vxpose.xlu0.b32.cont [13/16] (narrow) %v1716_v31, 8  ;;  %v1720_v33 = vpop.eup %1719 }
 0x2ca   : > { %v1722_v34 = vpop.eup %1721 }
 0x2cc   : > { %1136 = vxpose.xlu0.b32.cont [14/16] (narrow) %v1718_v32, 8 }
 0x2d0   : > { %1137 = vxpose.xlu0.b32.cont [15/16] (narrow) %v1720_v33, 8 }
 0x2d4   : > { %1138 = vxpose.xlu0.b32.end [16/16] (narrow) %v1722_v34, 8 }
 0x314   : > { %v1139_v35 = vpop.trf.xlu0 }
 0x315   : > { %1155 = vst [vmem:[%s2176_s17] sm:$0x1] %v1139_v35 }
 0x316 PF: > { %s2411_s4 = sld [smem:[#allocation21_spill]]  ;;  %s1348_s27 = sshll.u32 %s1911_s25, 4 }
 0x317   : > { %s2412_s5 = sld [smem:[#allocation24_spill]]  ;;  %s1169_s23 = sshll.u32 %s2176_s17, 4  ;;  %s1170_s23 = int_to_ptr.vmem [resolvable:$true] %s1169_s23 }
 0x318   : > { %s1157_s8 = scalar_lea.sflag [#allocation5], %s276_s9  ;;  %s1775_s7 = scalar_lea.vmem %s1170_s23, 16 }
 0x319   : > { %p1776_p13 = scmp.ne.s32.totalorder %s1170_s23, %s1775_s7  ;;  %s1934_s30 = smov [#allocation8]  }
 0x31a   : > { %s1779_s14 = sshll.u32 %s1934_s30, 4  ;;  %s1780_s14 = int_to_ptr.vmem [resolvable:$false] %s1779_s14 }
 0x31b   : > { %s1781_s10 = scalar_lea.vmem %s1780_s14, 32  ;;  %p1782_p3 = scmp.lt.s32.totalorder %s1170_s23, %s1780_s14 }
 0x31c   : > { %p2413_p0 = scmp.ne.s32.totalorder %s2411_s4, 0  ;;  %p1783_p1 = scmp.lt.s32.totalorder %s1781_s10, %s1775_s7 }
 0x31d   : > { %s1167_s11 = scalar_lea.hbm %s2412_s5, %s1348_s27 }
 0x31e   : > { %p1777_p9 = pnand %p1776_p13, %p2413_p0  ;;  %p1784_p4 = por %p1783_p1, %p1782_p3 }
 0x320   : > { %p1778_p7 = pneg %p1777_p9 }
 0x322   : > { %p1785_p2 = pnand %p1784_p4, %p1778_p7 }
 0x324   : > { %1788 = shalt.err (!%p1785_p2)
}
 0x325   : > { %s1789_s25 = scalar_lea.hbm %s1167_s11, 16  ;;  %s1793_s24 = scalar_lea.hbm %s2412_s5, 48 }
 0x326   : > { %p1790_p5 = scmp.ne.s32.totalorder %s1167_s11, %s1789_s25  ;;  %p1794_p11 = scmp.lt.s32.totalorder %s1167_s11, %s2412_s5 }
 0x327   : > { %p1795_p8 = scmp.lt.s32.totalorder %s1793_s24, %s1789_s25 }
 0x328   : > { %p1791_p6 = pnand %p1790_p5, %p2413_p0 }
 0x329   : > { %p1796_p12 = por %p1795_p8, %p1794_p11 }
 0x32a   : > { %p1792_p10 = pneg %p1791_p6 }
 0x32c   : > { %p1797_p13 = pnand %p1796_p12, %p1792_p10 }
 0x32e   : > { %1800 = shalt.err (!%p1797_p13)
}
 0x32f   : > { %1453 = dma.vmem_to_hbm [thread:$0]  (%p2413_p0), %s1170_s23, 16, %s1167_s11, %s1157_s8  }
 0x330 PF: > { %s2414_s0 = sld [smem:[#allocation12_spill]]  ;;  %p1459_p9 = scmp.ge.s32.totalorder %s1923_s28, 2 }
 0x331   : > { %s2415_s18 = sld [smem:[#allocation22_spill]] }
 0x336   : > { %s1181_s12 = sand.u32 1, %s2414_s0  }
 0x337   : > { %p2416_p7 = scmp.ne.s32.totalorder %s2415_s18, 0  ;;  %s1182_s29 = scalar_lea.sflag [#allocation5], %s1181_s12 }
 0x339   : > { %p1456_p3 = pnand %p1459_p9, %p2416_p7 }
 0x33b   : > { %p1457_p1 = pneg %p1456_p3 }
 0x33d   : > { %1866 = dma.done.wait (%p1457_p1), %s1182_s29, 16  }
 0x33e   : > { %1868 = vsyncadd (%p1457_p1), %s1182_s29, 4294967280  ;;  %s23_s28 = sadd.s32 1, %s1923_s28   ;;  %s2418_s4 = sld [smem:[#allocation13_spill]] }
 0x33f   : > { %p2324_p4 = scmp.ge.s32.totalorder %s23_s28, 8   ;;  %s2419_s17 = sld [smem:[#allocation20_spill]] }
 0x340   : > { %s2420_s21 = sld [smem:[#allocation18_spill]]  ;;  %s2427_s15 = smov %s1875_s16 }
 0x341   : > { %s2421_s13 = sld [smem:[#allocation14_spill]]  ;;  %s2429_s18 = smov %s1887_s19 }
 0x342   : > { %s2422_s23 = sld [smem:[#allocation19_spill]]  ;;  %s2430_s19 = smov %s1891_s20 }
 0x343   : > { %s2423_s25 = sld [smem:[#allocation15_spill]]  ;;  %s2434_s24 = smov %s1915_s26 }
 0x344   : > { %s2424_s11 = sld [smem:[#allocation16_spill]]  ;;  %s2428_s16 = smov %s2418_s4 }
 0x345   : > { %s2425_s8 = sld [smem:[#allocation17_spill]] }
 0x346   : > { %s2431_s20 = smov %s2420_s21  ;;  %s2432_s21 = smov %s1899_s22 }
 0x347   : > { %s2433_s22 = smov %s2421_s13  ;;  %22 = sbr.rel (!%p2324_p4) target bundleno = 15 (0xf), region = 102 }
 0x34a   : > { %s2435_s26 = smov %s2424_s11 }
 0x34b   : > { %s2436_s27 = smov %s2425_s8 }
 0x34c   :  { %1186 = vsyncpa [#allocation4], 1 }
 0x34d   :  { %1188 = vsyncpa [#allocation4 + $0x1], 1 }
 0x34e   :  { %1189 = vsyncpa [#allocation7], 1 }
 0x34f   :  { %1191 = vsyncpa [#allocation7 + $0x1], 1 }
 0x350   :  { %1192 = vsyncpa [#allocation5], 1 }
 0x351   :  { %1194 = vsyncpa [#allocation5 + $0x1], 1 }

</bundles_post_ra>
